<compile_context>
chip_gen: v6e
topology: v6e:2x2x1
jax: 0.10.0
libtpu: 0.0.40
codegen_flags: <defaults>
</compile_context>

<pallas_src>
import jax
import jax.numpy as jnp
from jax import lax
from jax.experimental import pallas as pl
from jax.experimental.pallas import tpu as pltpu

BN_EPS = 1e-5


def _critic_kernel(x_ref, w1_ref, w2_ref, pk_ref, o_ref):
    """Fused MLP: (Linear -> BatchNorm(train) -> ReLU) x 2 -> Linear(->1).

    pk_ref rows (f32, padded to Hmax = max(h0, h1) lanes):
      0: gamma1   1: beta1   2: gamma2   3: beta2   4: w3 row   5: b3 (broadcast)
    """
    h0 = w1_ref.shape[1]
    h1 = w2_ref.shape[1]
    inv_b = jnp.float32(1.0 / x_ref.shape[0])

    def linear_bn_relu(h_in, w_ref, g, be):
        # Matmul in the weights' dtype (bf16 fast path on v6e/v7x), f32 accumulate.
        # Note: no bias add here — a pre-BN bias cancels in the mean subtraction.
        h = jnp.dot(h_in.astype(w_ref.dtype), w_ref[...],
                    preferred_element_type=jnp.float32)
        # Single-pass batch statistics (training-mode BN: biased variance).
        mean = jnp.sum(h, axis=0, keepdims=True) * inv_b
        ex2 = jnp.sum(h * h, axis=0, keepdims=True) * inv_b
        var = jnp.maximum(ex2 - mean * mean, 0.0)
        # Fold normalize + affine into one scale/shift on the [B, H] tensor.
        scale = g * lax.rsqrt(var + BN_EPS)
        shift = be - mean * scale
        return jnp.maximum(h * scale + shift, 0.0)

    x = x_ref[...]
    h = linear_bn_relu(x, w1_ref, pk_ref[0:1, 0:h0], pk_ref[1:2, 0:h0])
    h = linear_bn_relu(h, w2_ref, pk_ref[2:3, 0:h1], pk_ref[3:4, 0:h1])

    # Final Linear(h1 -> 1): lane reduce on the XLU instead of a 1-column MXU pass.
    w3_row = pk_ref[4:5, 0:h1]
    b3 = pk_ref[5:6, 0:1]
    out = jnp.sum(h * w3_row, axis=-1, keepdims=True) + b3
    o_ref[...] = out.astype(o_ref.dtype)


def critic_ppo_forward(state, params, *, use_bf16_matmul=False):
    """Runs the fused critic MLP on TPU via one grid-less pallas_call.

    state:  [B, state_dim] float32
    params: dict with w1,w2,w3 ([in,out]), b3 ([1,1]), g1,be1,g2,be2 ([1,H]).
            (b1/b2 may be present but are mathematically irrelevant pre-BN.)
    returns [B, 1] float32
    """
    B, state_dim = state.shape
    h0 = params["w1"].shape[1]
    h1 = params["w2"].shape[1]
    hmax = max(h0, h1)

    mm_dtype = jnp.bfloat16 if use_bf16_matmul else jnp.float32
    x = state.astype(mm_dtype)
    w1 = params["w1"].astype(mm_dtype)
    w2 = params["w2"].astype(mm_dtype)

    def row(v, fill=0.0):
        v = jnp.asarray(v, jnp.float32).reshape(-1)
        return jnp.pad(v, (0, hmax - v.shape[0]), constant_values=fill)

    b3_scalar = jnp.asarray(params["b3"], jnp.float32).reshape(())
    pk = jnp.stack(
        [
            row(params["g1"], 1.0), row(params["be1"]),
            row(params["g2"], 1.0), row(params["be2"]),
            row(params["w3"]),
            jnp.broadcast_to(b3_scalar, (hmax,)),
            jnp.zeros((hmax,), jnp.float32),   # pad rows -> 8 sublanes
            jnp.zeros((hmax,), jnp.float32),
        ],
        axis=0,
    )  # [8, hmax] f32

    inputs = (x, w1, w2, pk)

    def nbytes(a):
        return a.size * a.dtype.itemsize

    # Whole batch resident in VMEM (BN couples the batch). Budget it explicitly.
    est = sum(nbytes(a) for a in inputs) + B * 4          # inputs + output
    est += 4 * B * (h0 + h1) * 4                           # f32 activations / temps
    if est > (48 << 20):
        # TODO(synk): gridded two-pass BatchNorm (accumulate sum/sumsq over B-tiles,
        # then normalize) for batches too large to keep VMEM-resident.
        raise NotImplementedError(
            "batch too large for the single-block VMEM-resident critic kernel")
    vmem_limit = int(min(max(4 * est, 4 << 20), 64 << 20))

    flops = 2 * B * (state_dim * h0 + h0 * h1 + h1)
    cost = pl.CostEstimate(
        flops=flops,
        transcendentals=h0 + h1,                            # rsqrt per feature
        bytes_accessed=sum(nbytes(a) for a in inputs) + B * 4,
    )

    def full_spec(shape):
        nd = len(shape)
        return pl.BlockSpec(shape, lambda *_: (0,) * nd,
                            memory_space=pltpu.MemorySpace.VMEM)

    return pl.pallas_call(
        _critic_kernel,
        out_shape=jax.ShapeDtypeStruct((B, 1), jnp.float32),
        in_specs=[full_spec(a.shape) for a in inputs],
        out_specs=full_spec((B, 1)),
        compiler_params=pltpu.CompilerParams(vmem_limit_bytes=vmem_limit),
        cost_estimate=cost,
    )(*inputs)


def init_params(key, state_dim, hidden_dims):
    """Deterministic synthetic parameters matching CriticPPO([h0, h1], state_dim, _)."""
    dims = [state_dim, *hidden_dims, 1]
    params = {}
    keys = jax.random.split(key, 2 * (len(dims) - 1))
    for i in range(len(dims) - 1):
        fan_in, fan_out = dims[i], dims[i + 1]
        w = jax.random.normal(keys[2 * i], (fan_in, fan_out), jnp.float32) * 0.1
        b = jax.random.normal(keys[2 * i + 1], (1, fan_out), jnp.float32) * 0.01
        params[f"w{i + 1}"] = w          # stored pre-transposed: [in, out]
        params[f"b{i + 1}"] = b          # [1, out] (b1/b2 unused by kernel: pre-BN)
        if i < len(dims) - 2:            # BN only on hidden layers (last BN deleted)
            params[f"g{i + 1}"] = jnp.ones((1, fan_out), jnp.float32)    # gamma
            params[f"be{i + 1}"] = jnp.zeros((1, fan_out), jnp.float32)  # beta
    return params


def reference_forward(state, params):
    """Pure-JAX reference (PyTorch-equivalent math incl. biases) for checking."""
    h = state
    for i in (1, 2):
        h = h @ params[f"w{i}"] + params[f"b{i}"]
        mean = jnp.mean(h, axis=0, keepdims=True)
        var = jnp.mean((h - mean) ** 2, axis=0, keepdims=True)
        h = (h - mean) / jnp.sqrt(var + BN_EPS)
        h = h * params[f"g{i}"] + params[f"be{i}"]
        h = jnp.maximum(h, 0.0)
    return h @ params["w3"] + params["b3"]


if __name__ == "__main__":
    # Small shapes: CriticPPO(dims=[32, 32], state_dim=16, _action_dim=4)
    B, STATE_DIM, HIDDEN = 8, 16, (32, 32)

    key = jax.random.PRNGKey(0)
    k_state, k_params = jax.random.split(key)
    state = jax.random.normal(k_state, (B, STATE_DIM), jnp.float32)
    params = init_params(k_params, STATE_DIM, HIDDEN)

    ref = reference_forward(state, params)

    # f32 path: matches the PyTorch module numerics tightly.
    value = jax.block_until_ready(critic_ppo_forward(state, params))
    assert value.shape == (B, 1)
    assert jnp.allclose(value, ref, atol=1e-4, rtol=1e-4), (value, ref)

    # bf16-matmul fast path (v6e/v7x): BN/ReLU stay f32, looser tolerance.
    value_bf16 = jax.block_until_ready(
        critic_ppo_forward(state, params, use_bf16_matmul=True))
    assert value_bf16.shape == (B, 1)
    assert jnp.allclose(value_bf16, ref, atol=5e-2, rtol=5e-2), (value_bf16, ref)

    print("KERNEL_OK")
</pallas_src>

<mosaic_0001>
module attributes {stable_mosaic.version = 11 : i64} {
  func.func @_critic_kernel(%arg0: memref<8x16xf32, #tpu.memory_space<vmem>>, %arg1: memref<16x32xf32, #tpu.memory_space<vmem>>, %arg2: memref<32x32xf32, #tpu.memory_space<vmem>>, %arg3: memref<8x32xf32, #tpu.memory_space<vmem>>, %arg4: memref<8x1xf32, #tpu.memory_space<vmem>>) attributes {dimension_semantics = [], scalar_prefetch = 0 : i64, scratch_operands = 0 : i64, tpu.core_type = #tpu.core_type<tc>} {
    %c0 = arith.constant 0 : index
    %c0_0 = arith.constant 0 : index
    %0 = vector.load %arg0[%c0, %c0_0] : memref<8x16xf32, #tpu.memory_space<vmem>>, vector<8x16xf32>
    %c0_1 = arith.constant 0 : index
    %c0_2 = arith.constant 0 : index
    %1 = vector.load %arg3[%c0_1, %c0_2] : memref<8x32xf32, #tpu.memory_space<vmem>>, vector<1x32xf32>
    %c1 = arith.constant 1 : index
    %c0_3 = arith.constant 0 : index
    %2 = vector.load %arg3[%c1, %c0_3] : memref<8x32xf32, #tpu.memory_space<vmem>>, vector<1x32xf32>
    %c0_4 = arith.constant 0 : index
    %c0_5 = arith.constant 0 : index
    %3 = vector.load %arg1[%c0_4, %c0_5] : memref<16x32xf32, #tpu.memory_space<vmem>>, vector<16x32xf32>
    %cst = arith.constant dense<0.000000e+00> : vector<8x32xf32>
    %4 = tpu.matmul %0, %3, %cst {dimension_numbers = #tpu.dot_dimension_numbers<[1], [0], [0], [1], [0, 0, 1, 1], [], []>} : vector<8x16xf32>, vector<16x32xf32>, vector<8x32xf32> -> vector<8x32xf32>
    %cst_6 = arith.constant dense<0.000000e+00> : vector<32xf32>
    %5 = vector.multi_reduction <add>, %4, %cst_6 [0] : vector<8x32xf32> to vector<32xf32>
    %6 = vector.shape_cast %5 : vector<32xf32> to vector<1x32xf32>
    %cst_7 = arith.constant 1.250000e-01 : f32
    %7 = vector.broadcast %cst_7 : f32 to vector<1x32xf32>
    %8 = arith.mulf %6, %7 : vector<1x32xf32>
    %9 = arith.mulf %4, %4 : vector<8x32xf32>
    %cst_8 = arith.constant dense<0.000000e+00> : vector<32xf32>
    %10 = vector.multi_reduction <add>, %9, %cst_8 [0] : vector<8x32xf32> to vector<32xf32>
    %11 = vector.shape_cast %10 : vector<32xf32> to vector<1x32xf32>
    %cst_9 = arith.constant 1.250000e-01 : f32
    %12 = vector.broadcast %cst_9 : f32 to vector<1x32xf32>
    %13 = arith.mulf %11, %12 : vector<1x32xf32>
    %14 = arith.mulf %8, %8 : vector<1x32xf32>
    %15 = arith.subf %13, %14 : vector<1x32xf32>
    %cst_10 = arith.constant 0.000000e+00 : f32
    %16 = vector.broadcast %cst_10 : f32 to vector<1x32xf32>
    %17 = arith.maximumf %15, %16 : vector<1x32xf32>
    %cst_11 = arith.constant 9.99999974E-6 : f32
    %18 = vector.broadcast %cst_11 : f32 to vector<1x32xf32>
    %19 = arith.addf %17, %18 : vector<1x32xf32>
    %20 = math.rsqrt %19 : vector<1x32xf32>
    %21 = arith.mulf %1, %20 : vector<1x32xf32>
    %22 = arith.mulf %8, %21 : vector<1x32xf32>
    %23 = arith.subf %2, %22 : vector<1x32xf32>
    %24 = vector.broadcast %21 : vector<1x32xf32> to vector<8x32xf32>
    %25 = arith.mulf %4, %24 : vector<8x32xf32>
    %26 = vector.broadcast %23 : vector<1x32xf32> to vector<8x32xf32>
    %27 = arith.addf %25, %26 : vector<8x32xf32>
    %cst_12 = arith.constant 0.000000e+00 : f32
    %28 = vector.broadcast %cst_12 : f32 to vector<8x32xf32>
    %29 = arith.maximumf %27, %28 : vector<8x32xf32>
    %c2 = arith.constant 2 : index
    %c0_13 = arith.constant 0 : index
    %30 = vector.load %arg3[%c2, %c0_13] : memref<8x32xf32, #tpu.memory_space<vmem>>, vector<1x32xf32>
    %c3 = arith.constant 3 : index
    %c0_14 = arith.constant 0 : index
    %31 = vector.load %arg3[%c3, %c0_14] : memref<8x32xf32, #tpu.memory_space<vmem>>, vector<1x32xf32>
    %c0_15 = arith.constant 0 : index
    %c0_16 = arith.constant 0 : index
    %32 = vector.load %arg2[%c0_15, %c0_16] : memref<32x32xf32, #tpu.memory_space<vmem>>, vector<32x32xf32>
    %cst_17 = arith.constant dense<0.000000e+00> : vector<8x32xf32>
    %33 = tpu.matmul %29, %32, %cst_17 {dimension_numbers = #tpu.dot_dimension_numbers<[1], [0], [0], [1], [0, 0, 1, 1], [], []>} : vector<8x32xf32>, vector<32x32xf32>, vector<8x32xf32> -> vector<8x32xf32>
    %cst_18 = arith.constant dense<0.000000e+00> : vector<32xf32>
    %34 = vector.multi_reduction <add>, %33, %cst_18 [0] : vector<8x32xf32> to vector<32xf32>
    %35 = vector.shape_cast %34 : vector<32xf32> to vector<1x32xf32>
    %cst_19 = arith.constant 1.250000e-01 : f32
    %36 = vector.broadcast %cst_19 : f32 to vector<1x32xf32>
    %37 = arith.mulf %35, %36 : vector<1x32xf32>
    %38 = arith.mulf %33, %33 : vector<8x32xf32>
    %cst_20 = arith.constant dense<0.000000e+00> : vector<32xf32>
    %39 = vector.multi_reduction <add>, %38, %cst_20 [0] : vector<8x32xf32> to vector<32xf32>
    %40 = vector.shape_cast %39 : vector<32xf32> to vector<1x32xf32>
    %cst_21 = arith.constant 1.250000e-01 : f32
    %41 = vector.broadcast %cst_21 : f32 to vector<1x32xf32>
    %42 = arith.mulf %40, %41 : vector<1x32xf32>
    %43 = arith.mulf %37, %37 : vector<1x32xf32>
    %44 = arith.subf %42, %43 : vector<1x32xf32>
    %cst_22 = arith.constant 0.000000e+00 : f32
    %45 = vector.broadcast %cst_22 : f32 to vector<1x32xf32>
    %46 = arith.maximumf %44, %45 : vector<1x32xf32>
    %cst_23 = arith.constant 9.99999974E-6 : f32
    %47 = vector.broadcast %cst_23 : f32 to vector<1x32xf32>
    %48 = arith.addf %46, %47 : vector<1x32xf32>
    %49 = math.rsqrt %48 : vector<1x32xf32>
    %50 = arith.mulf %30, %49 : vector<1x32xf32>
    %51 = arith.mulf %37, %50 : vector<1x32xf32>
    %52 = arith.subf %31, %51 : vector<1x32xf32>
    %53 = vector.broadcast %50 : vector<1x32xf32> to vector<8x32xf32>
    %54 = arith.mulf %33, %53 : vector<8x32xf32>
    %55 = vector.broadcast %52 : vector<1x32xf32> to vector<8x32xf32>
    %56 = arith.addf %54, %55 : vector<8x32xf32>
    %cst_24 = arith.constant 0.000000e+00 : f32
    %57 = vector.broadcast %cst_24 : f32 to vector<8x32xf32>
    %58 = arith.maximumf %56, %57 : vector<8x32xf32>
    %c4 = arith.constant 4 : index
    %c0_25 = arith.constant 0 : index
    %59 = vector.load %arg3[%c4, %c0_25] : memref<8x32xf32, #tpu.memory_space<vmem>>, vector<1x32xf32>
    %c5 = arith.constant 5 : index
    %c0_26 = arith.constant 0 : index
    %60 = vector.load %arg3[%c5, %c0_26] : memref<8x32xf32, #tpu.memory_space<vmem>>, vector<1x1xf32>
    %61 = vector.broadcast %59 : vector<1x32xf32> to vector<8x32xf32>
    %62 = arith.mulf %58, %61 : vector<8x32xf32>
    %cst_27 = arith.constant dense<0.000000e+00> : vector<8xf32>
    %63 = vector.multi_reduction <add>, %62, %cst_27 [1] : vector<8x32xf32> to vector<8xf32>
    %64 = vector.shape_cast %63 : vector<8xf32> to vector<8x1xf32>
    %65 = vector.broadcast %60 : vector<1x1xf32> to vector<8x1xf32>
    %66 = arith.addf %64, %65 : vector<8x1xf32>
    %c0_28 = arith.constant 0 : index
    %c0_29 = arith.constant 0 : index
    %67 = vector.load %arg4[%c0_28, %c0_29] : memref<8x1xf32, #tpu.memory_space<vmem>>, vector<8x1xf32>
    tpu.vector_store %arg4[%c0_28, %c0_29], %66 {strides = array<i32>} : memref<8x1xf32, #tpu.memory_space<vmem>>, vector<8x1xf32>,
    return
  }
}

</mosaic_0001>

<bundles_post_ra>
// kernel: tpu_custom_call.1
= control target key start
LH: loop header
LB: loop body
LE: loop exit
PB: predicated region body
PF: predicated region fallthrough
CT: control target
= control target key end

     0   :  { %9 = vsyncpa [#allocation3], 0  ;;  %s505_s0 = inlined_call_operand.hbm [shape: f32[8,16], index: 0, kind: input, shape index: {}]   ;;  %s506_s1 = inlined_call_operand.hbm [shape: f32[16,32], index: 1, kind: input, shape index: {}]   ;;  %s507_s2 = inlined_call_operand.hbm [shape: f32[32,32], index: 2, kind: input, shape index: {}]   ;;  %s508_s3 = inlined_call_operand.hbm [shape: f32[8,32], index: 3, kind: input, shape index: {}]   ;;  %s509_s4 = inlined_call_operand.vmem [shape: f32[8,1], index: 4, kind: output, shape index: {}]  }
   0x1   :  { %10 = vsyncpa [#allocation5], 0 }
   0x2   :  { %11 = vsyncpa [#allocation8], 0  ;;  %s451_s15 = smov [#allocation4]  }
   0x3   :  { %s27_s16 = sshll.u32 %s451_s15, 4  ;;  %s28_s16 = int_to_ptr.vmem [resolvable:$true] %s27_s16 }
   0x4   :  { %s373_s17 = scalar_lea.vmem %s28_s16, 256  ;;  %p378_p1 = scmp.lt.s32.totalorder %s28_s16, %s28_s16 }
   0x5   :  { %p374_p0 = scmp.ne.s32.totalorder %s28_s16, %s373_s17  ;;  %p379_p2 = scmp.lt.s32.totalorder %s373_s17, %s373_s17 }
   0x7   :  { %p380_p3 = por %p379_p2, %p378_p1 }
   0x9   :  { %p381_p4 = pnand %p380_p3, %p374_p0 }
   0xb   :  { %384 = shalt.err (!%p381_p4)
}
   0xc   :  { %s452_s18 = smov 128   ;;  %s453_s19 = smov 8  }
   0xd   :  { %33 = dma.hbm_to_vmem [thread:$0]  %s506_s1, 256, %s28_s16, [#allocation5], %s452_s18, %s452_s18, %s453_s19  }
   0xe   :  { %s454_s22 = smov [#allocation2]   ;;  %s455_s24 = smov [#allocation6]  }
   0xf   :  { %s18_s23 = sshll.u32 %s454_s22, 4  ;;  %s39_s25 = sshll.u32 %s455_s24, 4  ;;  %s19_s23 = int_to_ptr.vmem [resolvable:$true] %s18_s23  ;;  %s40_s25 = int_to_ptr.vmem [resolvable:$true] %s39_s25 }
  0x10   :  { %s393_s26 = scalar_lea.vmem %s19_s23, 128  ;;  %p398_p6 = scmp.lt.s32.totalorder %s19_s23, %s19_s23 }
  0x11   :  { %p394_p5 = scmp.ne.s32.totalorder %s19_s23, %s393_s26  ;;  %p399_p7 = scmp.lt.s32.totalorder %s393_s26, %s393_s26 }
  0x13   :  { %p400_p8 = por %p399_p7, %p398_p6 }
  0x15   :  { %p401_p9 = pnand %p400_p8, %p394_p5 }
  0x17   :  { %404 = shalt.err (!%p401_p9)
}
  0x18   :  { %21 = dma.hbm_to_vmem [thread:$0]  %s505_s0, 128, %s19_s23, [#allocation3]  }
  0x19   :  { %s413_s29 = scalar_lea.vmem %s40_s25, 512  ;;  %p418_p11 = scmp.lt.s32.totalorder %s40_s25, %s40_s25 }
  0x1a   :  { %p414_p10 = scmp.ne.s32.totalorder %s40_s25, %s413_s29  ;;  %p419_p12 = scmp.lt.s32.totalorder %s413_s29, %s413_s29 }
  0x1c   :  { %p420_p13 = por %p419_p12, %p418_p11 }
  0x1e   :  { %p421_p0 = pnand %p420_p13, %p414_p10 }
  0x20   :  { %424 = shalt.err (!%p421_p0)
}
  0x21   :  { %45 = dma.hbm_to_vmem [thread:$0]  %s507_s2, 512, %s40_s25, [#allocation5], %s452_s18, %s452_s18, %s453_s19  }
  0x22   :  { %s456_s5 = smov [#allocation7]  }
  0x23   :  { %s52_s6 = sshll.u32 %s456_s5, 4  ;;  %s53_s6 = int_to_ptr.vmem [resolvable:$true] %s52_s6 }
  0x24   :  { %s433_s7 = scalar_lea.vmem %s53_s6, 128  ;;  %p438_p2 = scmp.lt.s32.totalorder %s53_s6, %s53_s6 }
  0x25   :  { %p434_p1 = scmp.ne.s32.totalorder %s53_s6, %s433_s7  ;;  %p439_p3 = scmp.lt.s32.totalorder %s433_s7, %s433_s7 }
  0x27   :  { %p440_p4 = por %p439_p3, %p438_p2 }
  0x29   :  { %p441_p5 = pnand %p440_p4, %p434_p1 }
  0x2b   :  { %444 = shalt.err (!%p441_p5)
}
  0x2c   :  { %55 = dma.hbm_to_vmem [thread:$0]  %s508_s3, 128, %s53_s6, [#allocation8]  }
  0x2d   :  { %445 = dma.done.wait [#allocation3], 128  }
  0x2e   :  { %446 = vsyncadd [#allocation3], 4294967168 }
  0x2f   :  { %447 = dma.done.wait [#allocation5], 768  }
  0x30   :  { %448 = vsyncadd [#allocation5], 4294966528 }
  0x31   :  { %449 = dma.done.wait [#allocation8], 128  }
  0x32   :  { %450 = vsyncadd [#allocation8], 4294967168  ;;  %v457_v0 = vmov 0.0   ;;  %vm458_vm0 = vmmov 0   ;;  %v72_v1 = vld [vmem:[#allocation4 + $0x8] sm:$0xff]  ;;  %v71_v2 = vld [vmem:[#allocation4] sm:$0xff]  ;;  %v173_v31 = vlaneseq }
  0x33   :  { %335 = vmatprep.subr.mxu0 %v457_v0  ;;  %339 = vmatprep.mubr.msk.f32.mxu0 %vm458_vm0, %v457_v0  ;;  %v68_v3 = vld [vmem:[#allocation2] sm:$0xff]  ;;  %vm73_vm1 = vcmask 130048   ;;  %v189_v4 = vld [vmem:[#allocation6 + $0x18] sm:$0xff]  ;;  %v188_v5 = vld [vmem:[#allocation6 + $0x10] sm:$0xff]  ;;  %vm147_vm2 = vcmask 261120   ;;  %vm314_vm3 = vcmask 7168  }
  0x34   :  { %342 = vmatprep.subr.mxu1 %v457_v0  ;;  %350 = vmatprep.mubr.msk.f32.mxu1 %vm458_vm0, %v457_v0  ;;  %v187_v6 = vld [vmem:[#allocation6 + $0x8] sm:$0xff]  ;;  %v186_v7 = vld [vmem:[#allocation6] sm:$0xff]  ;;  %v174_v32 = vshrl.u32 %v173_v31, 7 }
  0x35   :  { %336 = vmatpush3.msra.mxu0 %v72_v1  ;;  %343 = vmatpush3.msra.mxu1 %v189_v4  ;;  %v69_v33 = vld [vmem:[#allocation7] sm:$0x1]  ;;  %v70_v37 = vld [vmem:[#allocation7 + $0x1] sm:$0x1]  ;;  %v184_v4 = vld [vmem:[#allocation7 + $0x2] sm:$0x1] }
  0x36   :  { %337 = vmatprep.subr.mxu0 %v457_v0  ;;  %344 = vmatprep.subr.mxu1 %v457_v0  ;;  %v175_v34 = vsub.s32 0, %v174_v32 }
  0x37   :  { %338 = vmatpush3.msra.mxu0 %v71_v2  ;;  %345 = vmatpush3.msra.mxu1 %v188_v5 }
  0x38   :  { %340 = vmatmul.mubr.msk.f32.vlgmr.msra.gmra.mxu0 %vm73_vm1, %v68_v3  ;;  %346 = vmatprep.subr.mxu1 %v457_v0 }
  0x39   :  { %347 = vmatpush3.msra.mxu1 %v187_v6 }
  0x3a   :  { %348 = vmatprep.subr.mxu1 %v457_v0 }
  0x3b   :  { %349 = vmatpush3.msra.mxu1 %v186_v7  ;;  %v185_v7 = vld [vmem:[#allocation7 + $0x3] sm:$0x1] }
  0xf8   :  { %v143_v8 = vpop.f32.mrf.mxu0 }
  0xf9   :  { %v148_v9 = vsel %vm147_vm2, %v143_v8, 0.0  ;;  %v156_v10 = vmul.f32 %v143_v8, %v143_v8 }
  0xfa   :  { %v149_v11 = vrot.slane %v148_v9, 4  ;;  %v341_v12 = vpop.f32.mrf.mxu0 }
  0xfb   :  { %v157_v13 = vsel %vm147_vm2, %v156_v10, 0.0 }
  0xfc   :  { %v150_v14 = vadd.f32 %v149_v11, %v148_v9  ;;  %v158_v15 = vrot.slane %v157_v13, 4 }
  0xfe   :  { %v151_v16 = vrot.slane %v150_v14, 2  ;;  %v159_v17 = vadd.f32 %v158_v15, %v157_v13 }
 0x100   :  { %v152_v18 = vadd.f32 %v151_v16, %v150_v14  ;;  %v160_v19 = vrot.slane %v159_v17, 2  ;;  %v325_v14 = vld [vmem:[#allocation7 + $0x4] ss:$0 sm:$0xff] }
 0x102   :  { %v153_v20 = vrot.slane %v152_v18, 1  ;;  %v161_v21 = vadd.f32 %v160_v19, %v159_v17 }
 0x104   :  { %v154_v22 = vadd.f32 %v153_v20, %v152_v18  ;;  %v162_v23 = vrot.slane %v161_v21, 1  ;;  %v326_v18 = vld [vmem:[#allocation7 + $0x5] ss:$0 sm:$0xff] }
 0x106   :  { %v155_v24 = vmul.f32 0.125, %v154_v22  ;;  %v163_v25 = vadd.f32 %v162_v23, %v161_v21 }
 0x108   :  { %v164_v26 = vmul.f32 0.125, %v163_v25  ;;  %v165_v27 = vmul.f32 %v155_v24, %v155_v24 }
 0x10a   :  { %v166_v28 = vsub.f32 %v164_v26, %v165_v27 }
 0x10c   :  { %v167_v29 = vmax.f32 %v166_v28, 0.0 }
 0x10e   :  { %v168_v30 = vadd.f32 1e-05, %v167_v29 }
 0x110   :  { %361 = vrsqrt.f32 %v168_v30 }
 0x11d   :  { %v362_v35 = vpop.eup %361 }
 0x11e   :  { %v170_v36 = vmul.f32 %v362_v35, %v69_v33 }
 0x120   :  { %v171_v38 = vmul.f32 %v170_v36, %v155_v24  ;;  %v176_v39 = vrot.slane %v170_v36, %v175_v34 }
 0x122   :  { %v172_v40 = vsub.f32 %v70_v37, %v171_v38  ;;  %v177_v41 = vmul.f32 %v176_v39, %v143_v8 }
 0x124   :  { %v181_v42 = vrot.slane %v172_v40, %v175_v34 }
 0x126   :  { %v182_v43 = vadd.f32 %v181_v42, %v177_v41 }
 0x128   :  { %v183_v44 = vmax.f32 %v182_v43, 0.0 }
 0x12a   :  { %351 = vmatmul.mubr.msk.f32.vlgmr.msra.gmra.mxu1 %vm147_vm2, %v183_v44 }
 0x1ea   :  { %v259_v45 = vpop.f32.mrf.mxu1 }
 0x1eb   :  { %v263_v46 = vsel %vm147_vm2, %v259_v45, 0.0  ;;  %v271_v47 = vmul.f32 %v259_v45, %v259_v45 }
 0x1ec   :  { %v264_v48 = vrot.slane %v263_v46, 4  ;;  %v352_v49 = vpop.f32.mrf.mxu1 }
 0x1ed   :  { %v272_v50 = vsel %vm147_vm2, %v271_v47, 0.0 }
 0x1ee   :  { %v265_v51 = vadd.f32 %v264_v48, %v263_v46  ;;  %v273_v52 = vrot.slane %v272_v50, 4 }
 0x1f0   :  { %v266_v53 = vrot.slane %v265_v51, 2  ;;  %v274_v54 = vadd.f32 %v273_v52, %v272_v50 }
 0x1f2   :  { %v267_v55 = vadd.f32 %v266_v53, %v265_v51  ;;  %v275_v56 = vrot.slane %v274_v54, 2 }
 0x1f4   :  { %v268_v57 = vrot.slane %v267_v55, 1  ;;  %v276_v58 = vadd.f32 %v275_v56, %v274_v54 }
 0x1f6   :  { %v269_v59 = vadd.f32 %v268_v57, %v267_v55  ;;  %v277_v60 = vrot.slane %v276_v58, 1 }
 0x1f8   :  { %v270_v61 = vmul.f32 0.125, %v269_v59  ;;  %v278_v62 = vadd.f32 %v277_v60, %v276_v58 }
 0x1fa   :  { %v279_v63 = vmul.f32 0.125, %v278_v62  ;;  %v280_v0 = vmul.f32 %v270_v61, %v270_v61 }
 0x1fc   :  { %v281_v1 = vsub.f32 %v279_v63, %v280_v0 }
 0x1fe   :  { %v282_v2 = vmax.f32 %v281_v1, 0.0 }
 0x200   :  { %v283_v3 = vadd.f32 1e-05, %v282_v2 }
 0x202   :  { %363 = vrsqrt.f32 %v283_v3 }
 0x20f   :  { %v364_v5 = vpop.eup %363 }
 0x210   :  { %v285_v6 = vmul.f32 %v364_v5, %v184_v4 }
 0x212   :  { %v286_v8 = vmul.f32 %v285_v6, %v270_v61  ;;  %v291_v9 = vrot.slane %v285_v6, %v175_v34 }
 0x214   :  { %v287_v10 = vsub.f32 %v185_v7, %v286_v8  ;;  %v292_v11 = vmul.f32 %v291_v9, %v259_v45 }
 0x216   :  { %v296_v12 = vrot.slane %v287_v10, %v175_v34 }
 0x218   :  { %v297_v13 = vadd.f32 %v296_v12, %v292_v11 }
 0x21a   :  { %v298_v15 = vmax.f32 %v297_v13, 0.0 }
 0x21c   :  { %v305_v16 = vmul.f32 %v325_v14, %v298_v15 }
 0x21e   :  { %v306_v17 = vsel %vm147_vm2, %v305_v16, 0.0 }
 0x21f   :  { %307 = vadd.xlane.f32.xlu0 %v306_v17 }
 0x2a8   :  { %v308_v19 = vpop.xlane.xlu0 %307 }
 0x2a9   :  { %v313_v20 = vadd.f32 %v326_v18, %v308_v19 }
 0x2ab   :  { %315 = vst.msk [vmem:[%s509_s4] sm:$0xff] %vm314_vm3, %v313_v20 }
 0x2ac   :  { %320 = vsyncpa [#allocation3], 1 }
 0x2ad   :  { %321 = vsyncpa [#allocation5], 1 }
 0x2ae   :  { %322 = vsyncpa [#allocation8], 1 }

</bundles_post_ra>
